<compile_context>
chip_gen: v6e
topology: v6e:2x2x1
jax: 0.10.0
libtpu: 0.0.40
codegen_flags: <defaults>
</compile_context>

<pallas_src>
from functools import partial

import jax
import jax.numpy as jnp
from jax.experimental import pallas as pl
from jax.experimental.pallas import tpu as pltpu

BN_EPS = 1e-5


def _res_graph_conv_kernel(x_ref, diag_ref, adjk_ref, w_ref, g_ref, be_ref,
                           out_ref, act_ref, *, D, mxu_dtype):
    layer = pl.program_id(0)

    @pl.when(layer == 0)
    def _():
        act_ref[...] = x_ref[...].astype(jnp.float32)

    inp = act_ref[...]                                              # (N, D) f32, j-major rows

    # --- SemGraphConv2: fused [W0 || W1] feature matmul, one MXU pass (bf16 in, f32 acc) ---
    h = jnp.dot(inp.astype(mxu_dtype), w_ref[...],
                preferred_element_type=jnp.float32)                 # (N, 2D)
    h0 = h[:, :D]                                                   # self-term features
    h1 = h[:, D:]                                                   # neighbour-term features

    # self connections: diag(adj) row scaling (VPU);   neighbours: ONE (N,N)@(N,D) MXU pass
    y = diag_ref[...] * h0 + jnp.dot(adjk_ref[...], h1.astype(mxu_dtype),
                                     preferred_element_type=jnp.float32)
    # (graph-conv bias omitted: cancelled exactly by the batch-stat mean subtraction below)

    # --- fused BatchNorm1d (training-mode stats, biased var) + ReLU ---
    mean = jnp.mean(y, axis=0, keepdims=True)                       # independent reductions
    msq = jnp.mean(y * y, axis=0, keepdims=True)
    var = msq - mean * mean
    scale = g_ref[...] * jax.lax.rsqrt(var + BN_EPS)                # (1, D), gamma folded in
    shift = be_ref[...] - mean * scale                              # (1, D), beta folded in
    act_ref[...] = jnp.maximum(y * scale + shift, 0.0)              # ReLU (p_dropout=None)

    @pl.when(layer == pl.num_programs(0) - 1)
    def _():
        out_ref[...] = (x_ref[...] + act_ref[...]).astype(out_ref.dtype)   # residual add


def res_graph_conv_forward(x, adj, params, *, mxu_dtype=jnp.bfloat16):
    """x: (B, J, Din), adj: (J, J). params = (w1cat, g1, be1, w2cat, g2, be2) — no biases."""
    w1cat, g1, be1, w2cat, g2, be2 = params
    B, J, Din = x.shape
    Dh = w1cat.shape[1] // 2
    Dout = w2cat.shape[1] // 2
    assert Din == Dout, "residual add requires input_dim == output_dim"
    assert Din == Dh == Dout, "layer-grid weight stacking requires input_dim == hid_dim == output_dim"
    N = J * B
    D = Dh

    # Layout plumbing (outside the kernel, plain XLA; all constant w.r.t. x except x itself):
    # j-major rows so both matmuls are plain lane-dense dots with no in-kernel reshapes.
    x_jb = jnp.transpose(x, (1, 0, 2)).reshape(N, Din).astype(jnp.float32)
    diag_rep = jnp.repeat(jnp.diagonal(adj), B).reshape(N, 1).astype(jnp.float32)
    adj_nbr = (adj * (1.0 - jnp.eye(J, dtype=adj.dtype))).astype(jnp.float32)
    adj_kron = jnp.kron(adj_nbr, jnp.eye(B, dtype=jnp.float32)).astype(mxu_dtype)   # (N, N)
    w_stack = jnp.stack([w1cat, w2cat], axis=0).astype(mxu_dtype)                   # (2, D, 2D)
    g_stack = jnp.stack([g1, g2], axis=0).astype(jnp.float32)                       # (2, 1, D)
    be_stack = jnp.stack([be1, be2], axis=0).astype(jnp.float32)                    # (2, 1, D)

    operands = (x_jb, diag_rep, adj_kron, w_stack, g_stack, be_stack)
    flops = 2 * (2 * N * D * (2 * D) + 2 * N * N * D)        # feature matmul + kron aggregation
    transcendentals = 2 * D                                  # two rsqrt calls of width D
    bytes_accessed = sum(int(a.size) * int(a.dtype.itemsize) for a in operands) + N * Dout * 4

    grid_spec = pltpu.PrefetchScalarGridSpec(
        num_scalar_prefetch=0,
        grid=(2,),                                            # one step per SemGraphConv2 layer
        in_specs=[
            pl.BlockSpec((N, Din), lambda l: (0, 0)),         # x: resident across both layers
            pl.BlockSpec((N, 1), lambda l: (0, 0)),           # diag(adj) replicated per batch
            pl.BlockSpec((N, N), lambda l: (0, 0)),           # kron(adj_nbr, I_B)
            pl.BlockSpec((None, Din, 2 * D), lambda l: (l, 0, 0)),   # per-layer fused weights
            pl.BlockSpec((None, 1, D), lambda l: (l, 0, 0)),         # per-layer BN gamma
            pl.BlockSpec((None, 1, D), lambda l: (l, 0, 0)),         # per-layer BN beta
        ],
        out_specs=pl.BlockSpec((N, Dout), lambda l: (0, 0)),  # written only on last step
        scratch_shapes=[pltpu.VMEM((N, D), jnp.float32)],     # activation carried across layers
    )

    out_jb = pl.pallas_call(
        partial(_res_graph_conv_kernel, D=D, mxu_dtype=mxu_dtype),
        out_shape=jax.ShapeDtypeStruct((N, Dout), jnp.float32),
        grid_spec=grid_spec,
        compiler_params=pltpu.CompilerParams(dimension_semantics=("arbitrary",)),
        cost_estimate=pl.CostEstimate(flops=int(flops),
                                      transcendentals=int(transcendentals),
                                      bytes_accessed=int(bytes_accessed)),
    )(*operands)
    return jnp.transpose(out_jb.reshape(J, B, Dout), (1, 0, 2))


def _ref_forward(x, adj, params):
    """Pure-JAX reference mirroring the PyTorch module (fp32, HIGHEST precision, bias kept)."""
    w1cat, b1, g1, be1, w2cat, b2, g2, be2 = params
    J = adj.shape[0]
    eye = jnp.eye(J, dtype=jnp.float32)
    hp = jax.lax.Precision.HIGHEST

    def layer(inp, wcat, b, g, be):
        D = wcat.shape[1] // 2
        h0 = jnp.einsum('bjd,de->bje', inp, wcat[:, :D], precision=hp)
        h1 = jnp.einsum('bjd,de->bje', inp, wcat[:, D:], precision=hp)
        y = (jnp.einsum('jk,bke->bje', adj * eye, h0, precision=hp)
             + jnp.einsum('jk,bke->bje', adj * (1.0 - eye), h1, precision=hp)
             + b[0][None, None, :])
        mean = jnp.mean(y, axis=(0, 1), keepdims=True)
        var = jnp.mean((y - mean) ** 2, axis=(0, 1), keepdims=True)
        y = (y - mean) * jax.lax.rsqrt(var + BN_EPS)
        y = y * g[0][None, None, :] + be[0][None, None, :]
        return jnp.maximum(y, 0.0)

    out = layer(x, w1cat, b1, g1, be1)
    out = layer(out, w2cat, b2, g2, be2)
    return x + out


if __name__ == "__main__":
    # input_dim == hid_dim == output_dim = 128 as in SemGCN (residual needs in==out).
    B, J, Dio, Dh = 2, 16, 128, 128

    key = jax.random.PRNGKey(0)
    kx, kadj, kw0a, kw1a, kba, kw0b, kw1b, kbb = jax.random.split(key, 8)

    x = jax.random.normal(kx, (B, J, Dio), dtype=jnp.float32)
    # Row-stochastic adjacency (SemGCN applies a softmax to its learnable adjacency).
    adj = jax.nn.softmax(jax.random.normal(kadj, (J, J), dtype=jnp.float32), axis=1)

    def make_layer_params(kw0, kw1, kb, cin, cout):
        scale = (2.0 / (cin + cout)) ** 0.5 * 1.414          # xavier-ish, gain=1.414
        w0 = scale * jax.random.normal(kw0, (cin, cout), dtype=jnp.float32)
        w1 = scale * jax.random.normal(kw1, (cin, cout), dtype=jnp.float32)
        wcat = jnp.concatenate([w0, w1], axis=1)             # fused (cin, 2*cout)
        stdv = 1.0 / (cout ** 0.5)
        bias = jax.random.uniform(kb, (1, cout), minval=-stdv, maxval=stdv,
                                  dtype=jnp.float32)
        gamma = jnp.ones((1, cout), dtype=jnp.float32)       # BatchNorm1d default weight
        beta = jnp.zeros((1, cout), dtype=jnp.float32)       # BatchNorm1d default bias
        return wcat, bias, gamma, beta

    w1cat, b1, g1, be1 = make_layer_params(kw0a, kw1a, kba, Dio, Dh)
    w2cat, b2, g2, be2 = make_layer_params(kw0b, kw1b, kbb, Dh, Dio)

    kernel_params = (w1cat, g1, be1, w2cat, g2, be2)          # bias dropped (BN cancels it)
    ref_params = (w1cat, b1, g1, be1, w2cat, b2, g2, be2)     # bias kept in the reference

    out = res_graph_conv_forward(x, adj, kernel_params)
    jax.block_until_ready(out)

    assert out.shape == (B, J, Dio)
    assert bool(jnp.all(jnp.isfinite(out)))
    ref = _ref_forward(x, adj, ref_params)
    assert bool(jnp.allclose(out, ref, rtol=5e-2, atol=5e-2)), \
        float(jnp.max(jnp.abs(out - ref)))
    print("KERNEL_OK")
</pallas_src>

<mosaic_0001>
module attributes {stable_mosaic.version = 11 : i64} {
  func.func @_res_graph_conv_kernel(%arg0: i32, %arg1: memref<32x128xf32, #tpu.memory_space<vmem>>, %arg2: memref<32x1xf32, #tpu.memory_space<vmem>>, %arg3: memref<32x32xbf16, #tpu.memory_space<vmem>>, %arg4: memref<1x128x256xbf16, #tpu.memory_space<vmem>>, %arg5: memref<1x1x128xf32, #tpu.memory_space<vmem>>, %arg6: memref<1x1x128xf32, #tpu.memory_space<vmem>>, %arg7: memref<32x128xf32, #tpu.memory_space<vmem>>, %arg8: memref<32x128xf32, #tpu.memory_space<vmem>>) attributes {dimension_semantics = [#tpu.dimension_semantics<arbitrary>], iteration_bounds = array<i64: 2>, scalar_prefetch = 0 : i64, scratch_operands = 1 : i64, tpu.core_type = #tpu.core_type<tc>, window_params = [{pipeline_mode = #tpu.pipeline_mode<synchronous>, transform_indices = @transform_0, window_bounds = array<i64: 32, 128>}, {pipeline_mode = #tpu.pipeline_mode<synchronous>, transform_indices = @transform_1, window_bounds = array<i64: 32, 1>}, {pipeline_mode = #tpu.pipeline_mode<synchronous>, transform_indices = @transform_2, window_bounds = array<i64: 32, 32>}, {transform_indices = @transform_3, window_bounds = array<i64: 1, 128, 256>}, {transform_indices = @transform_4, window_bounds = array<i64: 1, 1, 128>}, {transform_indices = @transform_5, window_bounds = array<i64: 1, 1, 128>}, {pipeline_mode = #tpu.pipeline_mode<synchronous>, transform_indices = @transform_6, window_bounds = array<i64: 32, 128>}]} {
    %c0_i32 = arith.constant 0 : i32
    %0 = arith.cmpi eq, %arg0, %c0_i32 : i32
    %1 = arith.extui %0 : i1 to i32
    %c0_i32_0 = arith.constant 0 : i32
    %2 = arith.cmpi ne, %1, %c0_i32_0 : i32
    scf.if %2 {
      %c0_25 = arith.constant 0 : index
      %c0_26 = arith.constant 0 : index
      %48 = vector.load %arg1[%c0_25, %c0_26] : memref<32x128xf32, #tpu.memory_space<vmem>>, vector<32x128xf32>
      %c0_27 = arith.constant 0 : index
      %c0_28 = arith.constant 0 : index
      %49 = vector.load %arg8[%c0_27, %c0_28] : memref<32x128xf32, #tpu.memory_space<vmem>>, vector<32x128xf32>
      tpu.vector_store %arg8[%c0_27, %c0_28], %48 {strides = array<i32>} : memref<32x128xf32, #tpu.memory_space<vmem>>, vector<32x128xf32>,
    } else {
    }
    %c0 = arith.constant 0 : index
    %c0_1 = arith.constant 0 : index
    %3 = vector.load %arg8[%c0, %c0_1] : memref<32x128xf32, #tpu.memory_space<vmem>>, vector<32x128xf32>
    %4 = arith.truncf %3 : vector<32x128xf32> to vector<32x128xbf16>
    %c0_2 = arith.constant 0 : index
    %c0_3 = arith.constant 0 : index
    %c0_4 = arith.constant 0 : index
    %5 = vector.load %arg4[%c0_2, %c0_3, %c0_4] : memref<1x128x256xbf16, #tpu.memory_space<vmem>>, vector<1x128x256xbf16>
    %6 = vector.shape_cast %5 : vector<1x128x256xbf16> to vector<128x256xbf16>
    %cst = arith.constant dense<0.000000e+00> : vector<32x256xf32>
    %7 = tpu.matmul %4, %6, %cst {dimension_numbers = #tpu.dot_dimension_numbers<[1], [0], [0], [1], [0, 0, 1, 1], [], []>} : vector<32x128xbf16>, vector<128x256xbf16>, vector<32x256xf32> -> vector<32x256xf32>
    %8 = vector.extract_strided_slice %7 {offsets = [0, 0], sizes = [32, 128], strides = [1, 1]} : vector<32x256xf32> to vector<32x128xf32>
    %9 = vector.extract_strided_slice %7 {offsets = [0, 128], sizes = [32, 128], strides = [1, 1]} : vector<32x256xf32> to vector<32x128xf32>
    %c0_5 = arith.constant 0 : index
    %c0_6 = arith.constant 0 : index
    %10 = vector.load %arg2[%c0_5, %c0_6] : memref<32x1xf32, #tpu.memory_space<vmem>>, vector<32x1xf32>
    %11 = vector.broadcast %10 : vector<32x1xf32> to vector<32x128xf32>
    %12 = arith.mulf %11, %8 : vector<32x128xf32>
    %c0_7 = arith.constant 0 : index
    %c0_8 = arith.constant 0 : index
    %13 = vector.load %arg3[%c0_7, %c0_8] : memref<32x32xbf16, #tpu.memory_space<vmem>>, vector<32x32xbf16>
    %14 = arith.truncf %9 : vector<32x128xf32> to vector<32x128xbf16>
    %cst_9 = arith.constant dense<0.000000e+00> : vector<32x128xf32>
    %15 = tpu.matmul %13, %14, %cst_9 {dimension_numbers = #tpu.dot_dimension_numbers<[1], [0], [0], [1], [0, 0, 1, 1], [], []>} : vector<32x32xbf16>, vector<32x128xbf16>, vector<32x128xf32> -> vector<32x128xf32>
    %16 = arith.addf %12, %15 : vector<32x128xf32>
    %cst_10 = arith.constant dense<0.000000e+00> : vector<128xf32>
    %17 = vector.multi_reduction <add>, %16, %cst_10 [0] : vector<32x128xf32> to vector<128xf32>
    %18 = vector.shape_cast %17 : vector<128xf32> to vector<1x128xf32>
    %cst_11 = arith.constant 3.200000e+01 : f32
    %19 = vector.broadcast %cst_11 : f32 to vector<1x128xf32>
    %20 = arith.divf %18, %19 : vector<1x128xf32>
    %21 = arith.mulf %16, %16 : vector<32x128xf32>
    %cst_12 = arith.constant dense<0.000000e+00> : vector<128xf32>
    %22 = vector.multi_reduction <add>, %21, %cst_12 [0] : vector<32x128xf32> to vector<128xf32>
    %23 = vector.shape_cast %22 : vector<128xf32> to vector<1x128xf32>
    %cst_13 = arith.constant 3.200000e+01 : f32
    %24 = vector.broadcast %cst_13 : f32 to vector<1x128xf32>
    %25 = arith.divf %23, %24 : vector<1x128xf32>
    %26 = arith.mulf %20, %20 : vector<1x128xf32>
    %27 = arith.subf %25, %26 : vector<1x128xf32>
    %c0_14 = arith.constant 0 : index
    %c0_15 = arith.constant 0 : index
    %c0_16 = arith.constant 0 : index
    %28 = vector.load %arg5[%c0_14, %c0_15, %c0_16] : memref<1x1x128xf32, #tpu.memory_space<vmem>>, vector<1x1x128xf32>
    %29 = vector.shape_cast %28 : vector<1x1x128xf32> to vector<1x128xf32>
    %cst_17 = arith.constant 9.99999974E-6 : f32
    %30 = vector.broadcast %cst_17 : f32 to vector<1x128xf32>
    %31 = arith.addf %27, %30 : vector<1x128xf32>
    %32 = math.rsqrt %31 : vector<1x128xf32>
    %33 = arith.mulf %29, %32 : vector<1x128xf32>
    %c0_18 = arith.constant 0 : index
    %c0_19 = arith.constant 0 : index
    %c0_20 = arith.constant 0 : index
    %34 = vector.load %arg6[%c0_18, %c0_19, %c0_20] : memref<1x1x128xf32, #tpu.memory_space<vmem>>, vector<1x1x128xf32>
    %35 = vector.shape_cast %34 : vector<1x1x128xf32> to vector<1x128xf32>
    %36 = arith.mulf %20, %33 : vector<1x128xf32>
    %37 = arith.subf %35, %36 : vector<1x128xf32>
    %38 = vector.broadcast %33 : vector<1x128xf32> to vector<32x128xf32>
    %39 = arith.mulf %16, %38 : vector<32x128xf32>
    %40 = vector.broadcast %37 : vector<1x128xf32> to vector<32x128xf32>
    %41 = arith.addf %39, %40 : vector<32x128xf32>
    %cst_21 = arith.constant 0.000000e+00 : f32
    %42 = vector.broadcast %cst_21 : f32 to vector<32x128xf32>
    %43 = arith.maximumf %41, %42 : vector<32x128xf32>
    %c0_22 = arith.constant 0 : index
    %c0_23 = arith.constant 0 : index
    %44 = vector.load %arg8[%c0_22, %c0_23] : memref<32x128xf32, #tpu.memory_space<vmem>>, vector<32x128xf32>
    tpu.vector_store %arg8[%c0_22, %c0_23], %43 {strides = array<i32>} : memref<32x128xf32, #tpu.memory_space<vmem>>, vector<32x128xf32>,
    %c1_i32 = arith.constant 1 : i32
    %45 = arith.cmpi eq, %arg0, %c1_i32 : i32
    %46 = arith.extui %45 : i1 to i32
    %c0_i32_24 = arith.constant 0 : i32
    %47 = arith.cmpi ne, %46, %c0_i32_24 : i32
    scf.if %47 {
      %c0_25 = arith.constant 0 : index
      %c0_26 = arith.constant 0 : index
      %48 = vector.load %arg1[%c0_25, %c0_26] : memref<32x128xf32, #tpu.memory_space<vmem>>, vector<32x128xf32>
      %c0_27 = arith.constant 0 : index
      %c0_28 = arith.constant 0 : index
      %49 = vector.load %arg8[%c0_27, %c0_28] : memref<32x128xf32, #tpu.memory_space<vmem>>, vector<32x128xf32>
      %50 = arith.addf %48, %49 : vector<32x128xf32>
      %c0_29 = arith.constant 0 : index
      %c0_30 = arith.constant 0 : index
      %51 = vector.load %arg7[%c0_29, %c0_30] : memref<32x128xf32, #tpu.memory_space<vmem>>, vector<32x128xf32>
      tpu.vector_store %arg7[%c0_29, %c0_30], %50 {strides = array<i32>} : memref<32x128xf32, #tpu.memory_space<vmem>>, vector<32x128xf32>,
    } else {
    }
    return
  }
  func.func @transform_0(%arg0: i32) -> (i32, i32) {
    %c0_i32 = arith.constant 0 : i32
    %c0_i32_0 = arith.constant 0 : i32
    %c0_i32_1 = arith.constant 0 : i32
    return %c0_i32, %c0_i32_0 : i32, i32
  }
  func.func @transform_1(%arg0: i32) -> (i32, i32) {
    %c0_i32 = arith.constant 0 : i32
    %c0_i32_0 = arith.constant 0 : i32
    %c0_i32_1 = arith.constant 0 : i32
    return %c0_i32, %c0_i32_0 : i32, i32
  }
  func.func @transform_2(%arg0: i32) -> (i32, i32) {
    %c0_i32 = arith.constant 0 : i32
    %c0_i32_0 = arith.constant 0 : i32
    %c0_i32_1 = arith.constant 0 : i32
    return %c0_i32, %c0_i32_0 : i32, i32
  }
  func.func @transform_3(%arg0: i32) -> (i32, i32, i32) {
    %c0_i32 = arith.constant 0 : i32
    %c0_i32_0 = arith.constant 0 : i32
    %c0_i32_1 = arith.constant 0 : i32
    return %arg0, %c0_i32, %c0_i32_0 : i32, i32, i32
  }
  func.func @transform_4(%arg0: i32) -> (i32, i32, i32) {
    %c0_i32 = arith.constant 0 : i32
    %c0_i32_0 = arith.constant 0 : i32
    %c0_i32_1 = arith.constant 0 : i32
    return %arg0, %c0_i32, %c0_i32_0 : i32, i32, i32
  }
  func.func @transform_5(%arg0: i32) -> (i32, i32, i32) {
    %c0_i32 = arith.constant 0 : i32
    %c0_i32_0 = arith.constant 0 : i32
    %c0_i32_1 = arith.constant 0 : i32
    return %arg0, %c0_i32, %c0_i32_0 : i32, i32, i32
  }
  func.func @transform_6(%arg0: i32) -> (i32, i32) {
    %c0_i32 = arith.constant 0 : i32
    %c0_i32_0 = arith.constant 0 : i32
    %c0_i32_1 = arith.constant 0 : i32
    return %c0_i32, %c0_i32_0 : i32, i32
  }
}

</mosaic_0001>

<bundles_post_ra>
// kernel: tpu_custom_call.1
= control target key start
LH: loop header
LB: loop body
LE: loop exit
PB: predicated region body
PF: predicated region fallthrough
CT: control target
= control target key end

     0   :  { %11 = vsyncpa [#allocation4], 0  ;;  %s1269_s0 = inlined_call_operand.vmem [shape: f32[32,128], index: 0, kind: input, shape index: {}]   ;;  %s1270_s1 = inlined_call_operand.vmem [shape: f32[32,1], index: 1, kind: input, shape index: {}]   ;;  %s1271_s2 = inlined_call_operand.hbm [shape: bf16[32,32], index: 2, kind: input, shape index: {}]   ;;  %s1272_s3 = inlined_call_operand.hbm [shape: bf16[2,128,256], index: 3, kind: input, shape index: {}]   ;;  %s1273_s4 = inlined_call_operand.vmem [shape: f32[2,1,128], index: 4, kind: input, shape index: {}]   ;;  %s1274_s5 = inlined_call_operand.vmem [shape: f32[2,1,128], index: 5, kind: input, shape index: {}]   ;;  %s1275_s6 = inlined_call_operand.hbm [shape: f32[32,128], index: 6, kind: output, shape index: {}]  }
   0x1   :  { %12 = vsyncpa [#allocation7], 0 }
   0x2   :  { %14 = vsyncpa [#allocation7 + $0x1], 0 }
   0x3   :  { %15 = vsyncpa [#allocation5], 0  ;;  %s1054_s21 = smov 0   ;;  %s1056_s22 = smov 0  }
   0x4   :  { %s1058_s23 = smov 0   ;;  %s1060_s24 = smov 0  }
   0x5 LB: > { %s1073_s25 = sadd.s32 4294967295, %s1007_s24   ;;  %p104_p0 = scmp.ne.s32.totalorder %s999_s22, %s995_s21  ;;  %s1007_s24 = sphi %s1060_s24, %s1291_s24   ;;  %s1003_s23 = sphi %s1058_s23, %s1290_s23   ;;  %s999_s22 = sphi %s1056_s22, %s1289_s22   ;;  %s995_s21 = sphi %s1054_s21, %s1288_s21  }
   0x6   : > { %p1276_p1 = scmp.eq.s32.totalorder %s1073_s25, 0  ;;  %p745_p2 = scmp.ge.s32.totalorder %s1007_s24, 1 }
   0x7   : > { %p188_p3 = scmp.lt.s32.totalorder %s1007_s24, 3  ;;  %s1009_s28 = smov [#allocation3]  }
   0x8   : > { %p1082_p5 = por %p1276_p1, %p104_p0  ;;  %s206_s29 = sshll.u32 %s1009_s28, 4  ;;  %s207_s29 = int_to_ptr.vmem [resolvable:$true] %s206_s29 }
   0x9   : > { %p1086_p6 = pnand %p745_p2, %p188_p3  ;;  %s1099_s7 = sadd.s32 1, %s1007_s24  }
   0xa   : > { %s1279_s26 = scalar_select %p1082_p5, 1, 0 }
   0xb   : > { %s1280_s27 = scalar_select %p1086_p6, 1, 0 }
   0xc   : > { %p803_p7 = pneg %p1086_p6  ;;  %s91_s8 = sadd.s32 1, %s1003_s23 }
   0xd   : > { %s88_s9 = ssub.s32 %s1007_s24, %s1099_s7  ;;  %s898_s10 = scalar_lea.vmem %s207_s29, 256 }
   0xe   : > { %p1094_p8 = pnand %p803_p7, %p1276_p1  ;;  %p899_p10 = scmp.ne.s32.totalorder %s207_s29, %s898_s10 }
   0xf   : > { %p906_p13 = scmp.lt.s32.totalorder %s207_s29, %s207_s29  ;;  %p907_p0 = scmp.lt.s32.totalorder %s898_s10, %s898_s10 }
  0x10   : > { %p889_p9 = pneg %p1094_p8 }
  0x11   : > { %p908_p2 = por %p907_p0, %p906_p13 }
  0x12   : > { %p901_p11 = pnand %p899_p10, %p889_p9 }
  0x14   : > { %p902_p12 = pneg %p901_p11 }
  0x16   : > { %p909_p3 = pnand %p908_p2, %p902_p12 }
  0x18   : > { %912 = shalt.err (!%p909_p3)
}
  0x19   : > { %s1010_s11 = smov 64   ;;  %s1011_s12 = smov 4  }
  0x1a   : > { %806 = dma.hbm_to_vmem [thread:$0]  (!%p1094_p8), %s1271_s2, 256, %s207_s29, [#allocation4], %s1010_s11, %s1010_s11, %s1011_s12  }
  0x1b   : > { %p89_p7 = scmp.eq.s32.totalorder %s88_s9, 0  ;;  %p98_p9 = scmp.ne.s32.totalorder %s1003_s23, %s999_s22 }
  0x1c   : > { %p99_p10 = scmp.eq.s32.totalorder %s1007_s24, 0  ;;  %p812_p11 = scmp.lt.s32.totalorder %s1007_s24, 2 }
  0x1d   : > { %s1116_s15 = scalar_select %p89_p7, %s1003_s23, %s91_s8  }
  0x1e   : > { %p100_p12 = por %p99_p10, %p98_p9  ;;  %s220_s16 = sand.u32 1, %s1003_s23  }
  0x1f   : > { %s748_s17 = sshll.u32 %s220_s16, 7  ;;  %s780_s18 = sshll.u32 %s1007_s24, 11 }
  0x20   : > { %s1123_s21 = scalar_lea.hbm %s1272_s3, %s780_s18  ;;  %s224_s28 = scalar_lea.vmem [#allocation6], %s748_s17 }
  0x21   : > { %s231_s29 = sshll.u32 %s224_s28, 4  ;;  %p1127_p8 = pnand %p812_p11, %p100_p12  ;;  %s1125_s29 = int_to_ptr.vmem [resolvable:$true] %s231_s29 }
  0x22   : > { %s1131_s8 = scalar_lea.sflag [#allocation7], %s220_s16  ;;  %s913_s24 = scalar_lea.hbm %s1123_s21, 2048 }
  0x23   : > { %p914_p13 = scmp.ne.s32.totalorder %s1123_s21, %s913_s24  ;;  %p915_p0 = pneg %p1127_p8 }
  0x24   : > { %s918_s11 = scalar_lea.hbm %s1272_s3, 4096  ;;  %p919_p7 = scmp.lt.s32.totalorder %s1123_s21, %s1272_s3 }
  0x25   : > { %p916_p2 = pnand %p915_p0, %p914_p13  ;;  %p920_p9 = scmp.lt.s32.totalorder %s918_s11, %s913_s24 }
  0x27   : > { %p917_p3 = pneg %p916_p2  ;;  %p921_p10 = por %p920_p9, %p919_p7 }
  0x29   : > { %p922_p11 = pnand %p921_p10, %p917_p3 }
  0x2b   : > { %925 = shalt.err (!%p922_p11)
}
  0x2c   : > { %s926_s14 = scalar_lea.vmem %s1125_s29, 2048  ;;  %s1012_s16 = smov [#allocation6]  }
  0x2d   : > { %p927_p12 = scmp.ne.s32.totalorder %s1125_s29, %s926_s14  ;;  %s931_s17 = sshll.u32 %s1012_s16, 4  ;;  %s932_s17 = int_to_ptr.vmem [resolvable:$false] %s931_s17 }
  0x2e   : > { %s933_s18 = scalar_lea.vmem %s932_s17, 4096  ;;  %p934_p2 = scmp.lt.s32.totalorder %s1125_s29, %s932_s17 }
  0x2f   : > { %p929_p4 = pnand %p927_p12, %p915_p0  ;;  %p935_p1 = scmp.lt.s32.totalorder %s933_s18, %s926_s14 }
  0x31   : > { %p930_p13 = pneg %p929_p4  ;;  %p936_p5 = por %p935_p1, %p934_p2 }
  0x33   : > { %p937_p6 = pnand %p936_p5, %p930_p13 }
  0x35   : > { %940 = shalt.err (!%p937_p6)
}
  0x36   : > { %s1013_s19 = smov 128   ;;  %s1014_s20 = smov 8  }
  0x37   : > { %810 = dma.hbm_to_vmem [thread:$0]  (!%p1127_p8), %s1123_s21, 2048, %s1125_s29, %s1131_s8, %s1013_s19, %s1013_s19, %s1014_s20  }
  0x38   : > { %p1283_p0 = scmp.ne.s32.totalorder %s1280_s27, 0 }
  0x39   : > { %p1284_p4 = scmp.eq.s32.totalorder (!%p1283_p0), %s1073_s25, 0 }
  0x3a   : > { %255 = sbr.rel (%p1283_p0) target bundleno = 611 (0x263), region = 44 }
  0x3f   : > { %982 = dma.done.wait (%p1284_p4), [#allocation4], 256   ;;  %p1285_p3 = pmov %p1284_p4 }
  0x40   : > { %s261_s28 = sand.u32 1, %s999_s22   ;;  %p1286_p1 = scmp.ne.s32.totalorder %s1279_s26, 0 }
  0x41   : > { %984 = vsyncadd (%p1285_p3), [#allocation4], 4294967040  ;;  %s753_s24 = sshll.u32 %s261_s28, 7  ;;  %s262_s9 = scalar_lea.sflag [#allocation7], %s261_s28 }
  0x42   : > { %s1159_s10 = scalar_lea.vmem [#allocation6], %s753_s24 }
  0x43   : > { %986 = dma.done.wait (%p1286_p1), %s262_s9, 2048  }
  0x44   : > { %988 = vsyncadd (%p1286_p1), %s262_s9, 4294965248  ;;  %p295_p5 = scmp.lt.s32.totalorder %s1073_s25, 1  ;;  %p1287_p6 = scmp.ne.s32.totalorder %s1073_s25, 0 }
  0x46   : > { %s1167_s27 = scalar_select %p295_p5, %s1073_s25, 1 }
  0x47   : > { %305 = sbr.rel (%p1287_p6) target bundleno = 79 (0x4f), region = 56 }
  0x48   : > { %s297_s30 = scalar_lea.vmem %s1273_s4, %s1167_s27  ;;  %s300_s12 = scalar_lea.vmem %s1274_s5, %s1167_s27 }
  0x4c   : > { %v306_v0 = vld [vmem:[%s1269_s0] sm:$0xff]  ;;  %v307_v1 = vld [vmem:[%s1269_s0 + $0x8] sm:$0xff]  ;;  %v308_v2 = vld [vmem:[%s1269_s0 + $0x10] sm:$0xff] }
  0x4d   : > { %310 = vst [vmem:[#allocation2 + $0x10] sm:$0xff] %v306_v0  ;;  %311 = vst [vmem:[#allocation2] sm:$0xff] %v307_v1  ;;  %v309_v3 = vld [vmem:[%s1269_s0 + $0x18] sm:$0xff] }
  0x4e   : > { %312 = vst [vmem:[#allocation2 + $0x18] sm:$0xff] %v308_v2  ;;  %313 = vst [vmem:[#allocation2 + $0x8] sm:$0xff] %v309_v3 }
  0x4f PF: > { %v859_v4 = vld [vmem:[%s1159_s10 + $0x74] ss:$8 sps:$4 sm:$0xff]   ;;  %v861_v5 = vld [vmem:[%s1159_s10 + $0x70] ss:$8 sps:$4 sm:$0xff]   ;;  %v1015_v6 = vmov 0   ;;  %v471_v15 = vld [vmem:[%s1270_s1 + $0x10] sm:$0xff] }
  0x50   : > { %448 = vmatprep.mubr.bf16.mxu0 %v1015_v6  ;;  %857 = vset.pattern.permute.xlu0 %v1015_v6  ;;  %v862_v7 = vld [vmem:[%s1159_s10 + $0x64] ss:$8 sps:$4 sm:$0xff]   ;;  %v864_v8 = vld [vmem:[%s1159_s10 + $0x60] ss:$8 sps:$4 sm:$0xff]   ;;  %v865_v9 = vld [vmem:[%s1159_s10 + $0x54] ss:$8 sps:$4 sm:$0xff]  }
  0x51   : > { %416 = vmatprep.subr.bf16.mxu0 %v859_v4  ;;  %858 = vset.pattern.permute.xlu1 %v1015_v6  ;;  %v867_v10 = vld [vmem:[%s1159_s10 + $0x50] ss:$8 sps:$4 sm:$0xff]   ;;  %v868_v11 = vld [vmem:[%s1159_s10 + $0x44] ss:$8 sps:$4 sm:$0xff]   ;;  %v870_v12 = vld [vmem:[%s1159_s10 + $0x40] ss:$8 sps:$4 sm:$0xff]  }
  0x52   : > { %417 = vmatpush1.bf16.msra.mxu0 %v861_v5  ;;  %v871_v13 = vld [vmem:[%s1159_s10 + $0x34] ss:$8 sps:$4 sm:$0xff]   ;;  %485 = vperm.xlu1 %858, %v471_v15   ;;  %v472_v17 = vld [vmem:[%s1270_s1 + $0x18] sm:$0xff]  ;;  %v873_v18 = vld [vmem:[%s1159_s10 + $0x30] ss:$8 sps:$4 sm:$0xff]   ;;  %vm513_vm0 = vcmask 261120  }
  0x53   : > { %418 = vmatprep.subr.bf16.mxu0 %v862_v7  ;;  %v469_v14 = vld [vmem:[%s1270_s1] sm:$0xff]  ;;  %v470_v16 = vld [vmem:[%s1270_s1 + $0x8] sm:$0xff]  ;;  %v874_v19 = vld [vmem:[%s1159_s10 + $0x24] ss:$8 sps:$4 sm:$0xff]   ;;  %p775_p8 = scmp.ne.s32.totalorder %s1073_s25, 1 }
  0x54   : > { %475 = vperm.xlu0 %857, %v469_v14   ;;  %v876_v20 = vld [vmem:[%s1159_s10 + $0x20] ss:$8 sps:$4 sm:$0xff]   ;;  %v877_v21 = vld [vmem:[%s1159_s10 + $0x14] ss:$8 sps:$4 sm:$0xff]   ;;  %v879_v22 = vld [vmem:[%s1159_s10 + $0x10] ss:$8 sps:$4 sm:$0xff]  }
  0x55   : > { %v880_v23 = vld [vmem:[%s1159_s10 + $0x4] ss:$8 sps:$4 sm:$0xff]   ;;  %v882_v24 = vld [vmem:[%s1159_s10] ss:$8 sps:$4 sm:$0xff]   ;;  %v315_v26 = vld [vmem:[#allocation2] sm:$0xff] }
  0x56   : > { %419 = vmatpush1.bf16.msra.mxu0 %v864_v8  ;;  %490 = vperm.xlu1 %858, %v472_v17   ;;  %v314_v25 = vld [vmem:[#allocation2 + $0x10] sm:$0xff]  ;;  %v316_v28 = vld [vmem:[#allocation2 + $0x18] sm:$0xff]  ;;  %v317_v29 = vld [vmem:[#allocation2 + $0x8] sm:$0xff] }
  0x57   : > { %420 = vmatprep.subr.bf16.mxu0 %v865_v9  ;;  %v318_v27 = vpack.c.bf16 %v315_v26, %v314_v25  ;;  %v319_v30 = vpack.c.bf16 %v317_v29, %v316_v28  ;;  %v883_v31 = vld [vmem:[#allocation3] sm:$0xff]   ;;  %v884_v42 = vld [vmem:[#allocation3 + $0x8] sm:$0xff]  }
  0x58   : > { %480 = vperm.xlu0 %857, %v470_v16   ;;  %789 = vmatprep.mubr.msk.bf16.mxu1 %vm513_vm0, %v883_v31  ;;  %v604_v28 = vld [vmem:[%s300_s12] sm:$0x1] }
  0x5a   : > { %421 = vmatpush1.bf16.msra.mxu0 %v867_v10 }
  0x5b   : > { %422 = vmatprep.subr.bf16.mxu0 %v868_v11 }
  0x5e   : > { %423 = vmatpush1.bf16.msra.mxu0 %v870_v12 }
  0x5f   : > { %424 = vmatprep.subr.bf16.mxu0 %v871_v13 }
  0x62   : > { %425 = vmatpush1.bf16.msra.mxu0 %v873_v18 }
  0x63   : > { %426 = vmatprep.subr.bf16.mxu0 %v874_v19 }
  0x66   : > { %427 = vmatpush1.bf16.msra.mxu0 %v876_v20 }
  0x67   : > { %428 = vmatprep.subr.bf16.mxu0 %v877_v21 }
  0x6a   : > { %429 = vmatpush1.bf16.msra.mxu0 %v879_v22  ;;  %v608_v22 = vlaneseq }
  0x6b   : > { %430 = vmatprep.subr.bf16.mxu0 %v880_v23 }
  0x6c   : > { %v609_v23 = vshrl.u32 %v608_v22, 7 }
  0x6e   : > { %431 = vmatpush1.bf16.msra.mxu0 %v882_v24  ;;  %v600_v24 = vld [vmem:[%s297_s30] sm:$0x1]  ;;  %v610_v25 = vsub.s32 0, %v609_v23 }
  0x71   : > { %449 = vmatmul.mubr.bf16.vlgmr.msra.gmra.mxu0 %v318_v27 }
  0x72   : > { %458 = vmatprep.mubr.bf16.mxu0 %v1015_v6 }
  0x79   : > { %459 = vmatmul.mubr.bf16.gmra.mxu0 %v319_v30 }
  0xcd   : > { %v486_v44 = vpop.permute.xlu1 %485 }
  0xcf   : > { %v476_v43 = vpop.permute.xlu0 %475 }
  0xd1   : > { %v491_v49 = vpop.permute.xlu1 %490 }
  0xd3   : > { %v481_v46 = vpop.permute.xlu0 %480 }
 0x131   : > { %v450_v32 = vpop.f32.mrf.mxu0 }
 0x132   : > { %v493_v48 = vmul.f32 %v476_v43, %v450_v32 }
 0x133   : > { %v452_v33 = vpop.f32.mrf.mxu0 }
 0x135   : > { %v454_v34 = vpop.f32.mrf.mxu0 }
 0x136   : > { %v494_v51 = vmul.f32 %v481_v46, %v454_v34 }
 0x137   : > { %v456_v35 = vpop.f32.mrf.mxu0 }
 0x138   : > { %v501_v41 = vpack.c.bf16 %v456_v35, %v452_v33 }
 0x139   : > { %v460_v36 = vpop.f32.mrf.mxu0 }
 0x13a   : > { %v495_v52 = vmul.f32 %v486_v44, %v460_v36 }
 0x13b   : > { %v462_v37 = vpop.f32.mrf.mxu0 }
 0x13d   : > { %v464_v38 = vpop.f32.mrf.mxu0 }
 0x13e   : > { %v496_v55 = vmul.f32 %v491_v49, %v464_v38 }
 0x13f   : > { %v466_v39 = vpop.f32.mrf.mxu0 }
 0x140   : > { %v502_v40 = vpack.c.bf16 %v466_v39, %v462_v37 }
 0x142   : > { %785 = vmatprep.subr.bf16.mxu1 %v502_v40 }
 0x143   : > { %786 = vmatpush3.bf16.msra.mxu1 %v502_v40 }
 0x144   : > { %787 = vmatprep.subr.bf16.mxu1 %v501_v41 }
 0x147   : > { %788 = vmatpush3.bf16.msra.mxu1 %v501_v41 }
 0x14a   : > { %790 = vmatmul.mubr.msk.bf16.vlgmr.msra.gmra.mxu1 %vm513_vm0, %v884_v42 }
 0x20a   : > { %v791_v45 = vpop.f32.mrf.mxu1 }
 0x20b   : > { %v571_v56 = vadd.f32 %v791_v45, %v495_v52 }
 0x20c   : > { %v554_v47 = vpop.f32.mrf.mxu1 }
 0x20d   : > { %v569_v53 = vadd.f32 %v554_v47, %v493_v48  ;;  %v586_v62 = vmul.f32 %v571_v56, %v571_v56 }
 0x20e   : > { %v792_v50 = vpop.f32.mrf.mxu1 }
 0x20f   : > { %v584_v58 = vmul.f32 %v569_v53, %v569_v53  ;;  %v572_v59 = vadd.f32 %v792_v50, %v496_v55 }
 0x210   : > { %v557_v54 = vpop.f32.mrf.mxu1 }
 0x211   : > { %v570_v57 = vadd.f32 %v557_v54, %v494_v51  ;;  %v587_v1 = vmul.f32 %v572_v59, %v572_v59 }
 0x213   : > { %v573_v60 = vadd.f32 %v570_v57, %v569_v53  ;;  %v585_v61 = vmul.f32 %v570_v57, %v570_v57 }
 0x215   : > { %v574_v63 = vadd.f32 %v573_v60, %v571_v56  ;;  %v588_v0 = vadd.f32 %v585_v61, %v584_v58 }
 0x217   : > { %v575_v2 = vadd.f32 %v574_v63, %v572_v59  ;;  %v589_v3 = vadd.f32 %v588_v0, %v586_v62 }
 0x219   : > { %v576_v4 = vrot.slane %v575_v2, 4  ;;  %v590_v5 = vadd.f32 %v589_v3, %v587_v1 }
 0x21b   : > { %v577_v6 = vadd.f32 %v576_v4, %v575_v2  ;;  %v591_v7 = vrot.slane %v590_v5, 4 }
 0x21d   : > { %v578_v8 = vrot.slane %v577_v6, 2  ;;  %v592_v9 = vadd.f32 %v591_v7, %v590_v5 }
 0x21f   : > { %v579_v10 = vadd.f32 %v578_v8, %v577_v6  ;;  %v593_v11 = vrot.slane %v592_v9, 2 }
 0x221   : > { %v580_v12 = vrot.slane %v579_v10, 1  ;;  %v594_v13 = vadd.f32 %v593_v11, %v592_v9 }
 0x223   : > { %v581_v14 = vadd.f32 %v580_v12, %v579_v10  ;;  %v595_v15 = vrot.slane %v594_v13, 1 }
 0x225   : > { %v583_v16 = vmul.f32 0.03125, %v581_v14  ;;  %v596_v17 = vadd.f32 %v595_v15, %v594_v13 }
 0x227   : > { %v597_v18 = vmul.f32 0.03125, %v596_v17  ;;  %v598_v19 = vmul.f32 %v583_v16, %v583_v16 }
 0x229   : > { %v599_v20 = vsub.f32 %v597_v18, %v598_v19 }
 0x22b   : > { %v601_v21 = vadd.f32 1e-05, %v599_v20 }
 0x22d   : > { %885 = vrsqrt.f32 %v601_v21 }
 0x23a   : > { %v886_v26 = vpop.eup %885 }
 0x23b   : > { %v603_v27 = vmul.f32 %v886_v26, %v600_v24 }
 0x23d   : > { %v605_v29 = vmul.f32 %v603_v27, %v583_v16  ;;  %v611_v30 = vrot.slane %v603_v27, %v610_v25 }
 0x23f   : > { %v606_v31 = vsub.f32 %v604_v28, %v605_v29  ;;  %v613_v32 = vmul.f32 %v611_v30, %v569_v53  ;;  %v614_v33 = vmul.f32 %v611_v30, %v570_v57  ;;  %v615_v34 = vmul.f32 %v611_v30, %v571_v56 }
 0x240   : > { %v616_v35 = vmul.f32 %v611_v30, %v572_v59 }
 0x241   : > { %v621_v36 = vrot.slane %v606_v31, %v610_v25 }
 0x243   : > { %v623_v37 = vadd.f32 %v621_v36, %v613_v32  ;;  %v624_v38 = vadd.f32 %v621_v36, %v614_v33  ;;  %v625_v39 = vadd.f32 %v621_v36, %v615_v34  ;;  %v626_v40 = vadd.f32 %v621_v36, %v616_v35 }
 0x244   : > { %638 = sbr.rel (%p775_p8) target bundleno = 595 (0x253), region = 60 }
 0x245   : > { %v627_v41 = vmax.f32 %v623_v37, 0.0  ;;  %v628_v42 = vmax.f32 %v624_v38, 0.0  ;;  %v629_v43 = vmax.f32 %v625_v39, 0.0  ;;  %v630_v44 = vmax.f32 %v626_v40, 0.0 }
 0x247   : > { %631 = vst [vmem:[#allocation2 + $0x10] sm:$0xff] %v627_v41  ;;  %632 = vst [vmem:[#allocation2] sm:$0xff] %v628_v42 }
 0x248   : > { %633 = vst [vmem:[#allocation2 + $0x18] sm:$0xff] %v629_v43  ;;  %634 = vst [vmem:[#allocation2 + $0x8] sm:$0xff] %v630_v44 }
 0x249   : > { %v639_v45 = vld [vmem:[%s1269_s0] sm:$0xff]  ;;  %v640_v47 = vld [vmem:[%s1269_s0 + $0x8] sm:$0xff]  ;;  %v641_v50 = vld [vmem:[%s1269_s0 + $0x10] sm:$0xff] }
 0x24a   : > { %v642_v54 = vld [vmem:[%s1269_s0 + $0x18] sm:$0xff] }
 0x24e   : > { %v643_v46 = vld [vmem:[#allocation2 + $0x10] sm:$0xff]  ;;  %v644_v49 = vld [vmem:[#allocation2] sm:$0xff] }
 0x24f   : > { %v647_v48 = vadd.f32 %v643_v46, %v639_v45  ;;  %v645_v51 = vld [vmem:[#allocation2 + $0x18] sm:$0xff]  ;;  %v648_v52 = vadd.f32 %v644_v49, %v640_v47  ;;  %v646_v55 = vld [vmem:[#allocation2 + $0x8] sm:$0xff] }
 0x250   : > { %v649_v53 = vadd.f32 %v645_v51, %v641_v50  ;;  %v650_v56 = vadd.f32 %v646_v55, %v642_v54 }
 0x251   : > { %651 = vst [vmem:[#allocation8] sm:$0xff] %v647_v48  ;;  %652 = vst [vmem:[#allocation8 + $0x8] sm:$0xff] %v648_v52 }
 0x252   : > { %653 = vst [vmem:[#allocation8 + $0x10] sm:$0xff] %v649_v53  ;;  %654 = vst [vmem:[#allocation8 + $0x18] sm:$0xff] %v650_v56 }
 0x253 PF: > { %p814_p7 = scmp.eq.s32.totalorder %s1073_s25, 1  ;;  %s1016_s24 = smov [#allocation8]  }
 0x254   : > { %s661_s9 = sshll.u32 %s1016_s24, 4  ;;  %s662_s9 = int_to_ptr.vmem [resolvable:$true] %s661_s9 }
 0x255   : > { %s941_s21 = scalar_lea.vmem %s662_s9, 512  ;;  %p948_p12 = scmp.lt.s32.totalorder %s662_s9, %s662_s9 }
 0x256   : > { %p942_p9 = scmp.ne.s32.totalorder %s662_s9, %s941_s21  ;;  %p949_p13 = scmp.lt.s32.totalorder %s941_s21, %s941_s21 }
 0x258   : > { %p943_p10 = pnand %p942_p9, %p814_p7  ;;  %p950_p2 = por %p949_p13, %p948_p12 }
 0x25a   : > { %p944_p11 = pneg %p943_p10 }
 0x25c   : > { %p951_p0 = pnand %p950_p2, %p944_p11 }
 0x25e   : > { %954 = shalt.err (!%p951_p0)
}
 0x25f   : > { %s1017_s29 = smov 128   ;;  %s1018_s8 = smov 8  }
 0x260   : > { %800 = dma.vmem_to_hbm [thread:$0]  (%p814_p7), %s662_s9, 512, %s1275_s6, [#allocation5], %s1017_s29, %s1017_s29, %s1018_s8  }
 0x261   : > { %990 = dma.done.wait (%p814_p7), [#allocation5], 512  }
 0x262   : > { %992 = vsyncadd (%p814_p7), [#allocation5], 4294966784 }
 0x263 PF: > { %p18_p4 = scmp.ge.s32.totalorder %s1099_s7, 4   ;;  %s1288_s21 = smov %s999_s22 }
 0x264   : > { %s1289_s22 = smov %s1003_s23  ;;  %s1290_s23 = smov %s1116_s15 }
 0x265   : > { %s1291_s24 = smov %s1099_s7  ;;  %20 = sbr.rel (!%p18_p4) target bundleno = 5 (0x5), region = 100 }
 0x26a   :  { %677 = vsyncpa [#allocation4], 1 }
 0x26b   :  { %679 = vsyncpa [#allocation4 + $0x1], 1 }
 0x26c   :  { %680 = vsyncpa [#allocation7], 1 }
 0x26d   :  { %682 = vsyncpa [#allocation7 + $0x1], 1 }
 0x26e   :  { %683 = vsyncpa [#allocation5], 1 }
 0x26f   :  { %685 = vsyncpa [#allocation5 + $0x1], 1 }

</bundles_post_ra>
